<compile_context>
chip_gen: v7x
topology: tpu7x:2x2x1
jax: 0.10.0
libtpu: 0.0.40
codegen_flags: <defaults>
</compile_context>

<pallas_src>
import math
from functools import partial

import jax
import jax.numpy as jnp
from jax.experimental import pallas as pl
from jax.experimental.pallas import tpu as pltpu

N_EMBED = 128
REDUCTION_FACTOR = 8
REDUCED_DIM = N_EMBED // REDUCTION_FACTOR  # 16


def _round_up(x, n):
    return ((x + n - 1) // n) * n


def _expert_kernel(x_ref, w1_ref, b1_ref, w2_ref, b2_ref, o_ref, *, tanh_gelu):
    # x_ref:  (tm, n_embed)    VMEM
    # w1_ref: (n_embed, red)   VMEM, grid-invariant resident
    # b1_ref: (1, red)         VMEM, grid-invariant resident
    # w2_ref: (red, n_embed)   VMEM, grid-invariant resident
    # b2_ref: (1, n_embed)     VMEM, grid-invariant resident
    x = x_ref[...]

    # fc1
    h = jnp.dot(x, w1_ref[...], preferred_element_type=jnp.float32) + b1_ref[...]

    if tanh_gelu:
        # tanh-approx GELU: transcendental goes to the EUP slot (frees VALU).
        c = jnp.float32(math.sqrt(2.0 / math.pi))
        h = 0.5 * h * (1.0 + jnp.tanh(c * (h + jnp.float32(0.044715) * h * h * h)))
    else:
        # exact GELU (PyTorch nn.GELU default): 0.5*x*(1+erf(x/sqrt(2)))
        inv_sqrt2 = jnp.float32(1.0 / math.sqrt(2.0))
        h = 0.5 * h * (1.0 + jax.lax.erf(h * inv_sqrt2))

    # fc2
    y = jnp.dot(h, w2_ref[...], preferred_element_type=jnp.float32) + b2_ref[...]
    o_ref[...] = y.astype(o_ref.dtype)


def lightweight_expert(x, w1, b1, w2, b2, *, tm=4096, gelu_tanh_approx=False):
    """x: (..., n_embed) float32. Returns same shape.

    tm: row tile of the flattened [M, n_embed] slab per grid step.
        Default 4096 (~10 MiB total VMEM with double buffering) — safe on
        v5e/v6e/v7x; sweep 2048..8192 on v5e/v6e if tuning further.
    gelu_tanh_approx: use tanh-approx GELU (EUP) instead of exact erf-GELU.
        Changes numerics vs PyTorch nn.GELU; keep False for exactness.
    """
    orig_shape = x.shape
    n_embed = orig_shape[-1]
    red = w1.shape[1]
    x2d = x.reshape(-1, n_embed)
    m = x2d.shape[0]

    # Row tile: multiple of 8 (sublane), capped by the problem size.
    tm = max(8, min(int(tm), _round_up(m, 8)))
    tm = _round_up(tm, 8)
    # Guarantee >= 2 grid steps when M allows so v7x megacore sharding kicks in.
    if m > 8 and pl.cdiv(m, tm) < 2:
        tm = _round_up(pl.cdiv(m, 2), 8)

    grid = (pl.cdiv(m, tm),)

    b1r = b1.reshape(1, -1)
    b2r = b2.reshape(1, -1)

    out = pl.pallas_call(
        partial(_expert_kernel, tanh_gelu=bool(gelu_tanh_approx)),
        out_shape=jax.ShapeDtypeStruct((m, n_embed), x.dtype),
        grid_spec=pltpu.PrefetchScalarGridSpec(
            num_scalar_prefetch=0,
            grid=grid,
            in_specs=[
                pl.BlockSpec((tm, n_embed), lambda i: (i, 0)),
                # Grid-invariant weight/bias residents (constant index maps).
                pl.BlockSpec((n_embed, red), lambda i: (0, 0)),
                pl.BlockSpec((1, red), lambda i: (0, 0)),
                pl.BlockSpec((red, n_embed), lambda i: (0, 0)),
                pl.BlockSpec((1, n_embed), lambda i: (0, 0)),
            ],
            out_specs=pl.BlockSpec((tm, n_embed), lambda i: (i, 0)),
        ),
        compiler_params=pltpu.CompilerParams(
            # Row tiles are independent -> shard across v7x's two TensorCores.
            dimension_semantics=("parallel",),
            # tm=4096 needs ~10 MiB incl. double buffering; 32 MiB keeps
            # headroom on v5e (16 MiB scoped default is too small) and stays
            # under half of v7x's 64 MiB physical VMEM.
            vmem_limit_bytes=32 * 1024 * 1024,
        ),
    )(x2d, w1, b1r, w2, b2r)

    return out.reshape(orig_shape)


def _init_params(key):
    """Deterministic init mimicking PyTorch Linear default (uniform +/-1/sqrt(fan_in))."""
    k1, k2, k3, k4 = jax.random.split(key, 4)
    bound1 = 1.0 / math.sqrt(N_EMBED)
    bound2 = 1.0 / math.sqrt(REDUCED_DIM)
    # stored as [in, out]
    w1 = jax.random.uniform(k1, (N_EMBED, REDUCED_DIM), jnp.float32, -bound1, bound1)
    b1 = jax.random.uniform(k2, (REDUCED_DIM,), jnp.float32, -bound1, bound1)
    w2 = jax.random.uniform(k3, (REDUCED_DIM, N_EMBED), jnp.float32, -bound2, bound2)
    b2 = jax.random.uniform(k4, (N_EMBED,), jnp.float32, -bound2, bound2)
    return w1, b1, w2, b2


def _reference(x, w1, b1, w2, b2):
    h = x @ w1 + b1
    h = 0.5 * h * (1.0 + jax.lax.erf(h / jnp.float32(math.sqrt(2.0))))
    return h @ w2 + b2


def _reference_tanh(x, w1, b1, w2, b2):
    h = x @ w1 + b1
    c = jnp.float32(math.sqrt(2.0 / math.pi))
    h = 0.5 * h * (1.0 + jnp.tanh(c * (h + jnp.float32(0.044715) * h * h * h)))
    return h @ w2 + b2


if __name__ == "__main__":
    key = jax.random.PRNGKey(0)
    kx, kp, kx2, kx3 = jax.random.split(key, 4)

    w1, b1, w2, b2 = _init_params(kp)

    # Small shapes: batch=2, seq=8, n_embed=128 (M=16 -> tm shrinks to 8, grid=2).
    x = jax.random.normal(kx, (2, 8, N_EMBED), dtype=jnp.float32)
    out = jax.block_until_ready(lightweight_expert(x, w1, b1, w2, b2))
    ref = _reference(x, w1, b1, w2, b2)
    assert out.shape == x.shape
    assert jnp.allclose(out, ref, atol=1e-5, rtol=1e-5)

    # Ragged M (batch=3, seq=5 -> M=15): exercises the partial last block
    # (masked output store, no wrapper-side padding/slicing).
    x2 = jax.random.normal(kx2, (3, 5, N_EMBED), dtype=jnp.float32)
    out2 = jax.block_until_ready(lightweight_expert(x2, w1, b1, w2, b2, tm=8))
    ref2 = _reference(x2, w1, b1, w2, b2)
    assert out2.shape == x2.shape
    assert jnp.allclose(out2, ref2, atol=1e-5, rtol=1e-5)

    # Slightly larger M (batch=4, seq=64 -> M=256): exercises the >=2-step
    # grid split with the default tm path.
    x3 = jax.random.normal(kx3, (4, 64, N_EMBED), dtype=jnp.float32)
    out3 = jax.block_until_ready(lightweight_expert(x3, w1, b1, w2, b2))
    ref3 = _reference(x3, w1, b1, w2, b2)
    assert out3.shape == x3.shape
    assert jnp.allclose(out3, ref3, atol=1e-5, rtol=1e-5)

    # Flagged tanh-approx GELU path (numerics-changing; validated against its
    # own pure-JAX reference).
    out4 = jax.block_until_ready(
        lightweight_expert(x3, w1, b1, w2, b2, gelu_tanh_approx=True))
    ref4 = _reference_tanh(x3, w1, b1, w2, b2)
    assert jnp.allclose(out4, ref4, atol=1e-5, rtol=1e-5)

    print("KERNEL_OK")
</pallas_src>

<mosaic_0001>
module attributes {stable_mosaic.version = 11 : i64} {
  func.func @_expert_kernel(%arg0: i32, %arg1: memref<8x128xf32, #tpu.memory_space<vmem>>, %arg2: memref<128x16xf32, #tpu.memory_space<vmem>>, %arg3: memref<1x16xf32, #tpu.memory_space<vmem>>, %arg4: memref<16x128xf32, #tpu.memory_space<vmem>>, %arg5: memref<1x128xf32, #tpu.memory_space<vmem>>, %arg6: memref<8x128xf32, #tpu.memory_space<vmem>>) attributes {dimension_semantics = [#tpu.dimension_semantics<parallel>], iteration_bounds = array<i64: 2>, scalar_prefetch = 0 : i64, scratch_operands = 0 : i64, tpu.core_type = #tpu.core_type<tc>, window_params = [{transform_indices = @transform_0, window_bounds = array<i64: 8, 128>}, {pipeline_mode = #tpu.pipeline_mode<synchronous>, transform_indices = @transform_1, window_bounds = array<i64: 128, 16>}, {pipeline_mode = #tpu.pipeline_mode<synchronous>, transform_indices = @transform_2, window_bounds = array<i64: 1, 16>}, {pipeline_mode = #tpu.pipeline_mode<synchronous>, transform_indices = @transform_3, window_bounds = array<i64: 16, 128>}, {pipeline_mode = #tpu.pipeline_mode<synchronous>, transform_indices = @transform_4, window_bounds = array<i64: 1, 128>}, {transform_indices = @transform_5, window_bounds = array<i64: 8, 128>}]} {
    %c0 = arith.constant 0 : index
    %c0_0 = arith.constant 0 : index
    %0 = vector.load %arg1[%c0, %c0_0] : memref<8x128xf32, #tpu.memory_space<vmem>>, vector<8x128xf32>
    %c0_1 = arith.constant 0 : index
    %c0_2 = arith.constant 0 : index
    %1 = vector.load %arg2[%c0_1, %c0_2] : memref<128x16xf32, #tpu.memory_space<vmem>>, vector<128x16xf32>
    %cst = arith.constant dense<0.000000e+00> : vector<8x16xf32>
    %2 = tpu.matmul %0, %1, %cst {dimension_numbers = #tpu.dot_dimension_numbers<[1], [0], [0], [1], [0, 0, 1, 1], [], []>} : vector<8x128xf32>, vector<128x16xf32>, vector<8x16xf32> -> vector<8x16xf32>
    %c0_3 = arith.constant 0 : index
    %c0_4 = arith.constant 0 : index
    %3 = vector.load %arg3[%c0_3, %c0_4] : memref<1x16xf32, #tpu.memory_space<vmem>>, vector<1x16xf32>
    %4 = vector.broadcast %3 : vector<1x16xf32> to vector<8x16xf32>
    %5 = arith.addf %2, %4 : vector<8x16xf32>
    %cst_5 = arith.constant 5.000000e-01 : f32
    %6 = vector.broadcast %cst_5 : f32 to vector<8x16xf32>
    %7 = arith.mulf %6, %5 : vector<8x16xf32>
    %cst_6 = arith.constant 0.707106769 : f32
    %8 = vector.broadcast %cst_6 : f32 to vector<8x16xf32>
    %9 = arith.mulf %5, %8 : vector<8x16xf32>
    %10 = math.erf %9 : vector<8x16xf32>
    %cst_7 = arith.constant 1.000000e+00 : f32
    %11 = vector.broadcast %cst_7 : f32 to vector<8x16xf32>
    %12 = arith.addf %11, %10 : vector<8x16xf32>
    %13 = arith.mulf %7, %12 : vector<8x16xf32>
    %c0_8 = arith.constant 0 : index
    %c0_9 = arith.constant 0 : index
    %14 = vector.load %arg4[%c0_8, %c0_9] : memref<16x128xf32, #tpu.memory_space<vmem>>, vector<16x128xf32>
    %cst_10 = arith.constant dense<0.000000e+00> : vector<8x128xf32>
    %15 = tpu.matmul %13, %14, %cst_10 {dimension_numbers = #tpu.dot_dimension_numbers<[1], [0], [0], [1], [0, 0, 1, 1], [], []>} : vector<8x16xf32>, vector<16x128xf32>, vector<8x128xf32> -> vector<8x128xf32>
    %c0_11 = arith.constant 0 : index
    %c0_12 = arith.constant 0 : index
    %16 = vector.load %arg5[%c0_11, %c0_12] : memref<1x128xf32, #tpu.memory_space<vmem>>, vector<1x128xf32>
    %17 = vector.broadcast %16 : vector<1x128xf32> to vector<8x128xf32>
    %18 = arith.addf %15, %17 : vector<8x128xf32>
    %c0_13 = arith.constant 0 : index
    %c0_14 = arith.constant 0 : index
    %19 = vector.load %arg6[%c0_13, %c0_14] : memref<8x128xf32, #tpu.memory_space<vmem>>, vector<8x128xf32>
    tpu.vector_store %arg6[%c0_13, %c0_14], %18 {strides = array<i32>} : memref<8x128xf32, #tpu.memory_space<vmem>>, vector<8x128xf32>,
    return
  }
  func.func @transform_0(%arg0: i32) -> (i32, i32) {
    %c0_i32 = arith.constant 0 : i32
    %c0_i32_0 = arith.constant 0 : i32
    return %arg0, %c0_i32 : i32, i32
  }
  func.func @transform_1(%arg0: i32) -> (i32, i32) {
    %c0_i32 = arith.constant 0 : i32
    %c0_i32_0 = arith.constant 0 : i32
    %c0_i32_1 = arith.constant 0 : i32
    return %c0_i32, %c0_i32_0 : i32, i32
  }
  func.func @transform_2(%arg0: i32) -> (i32, i32) {
    %c0_i32 = arith.constant 0 : i32
    %c0_i32_0 = arith.constant 0 : i32
    %c0_i32_1 = arith.constant 0 : i32
    return %c0_i32, %c0_i32_0 : i32, i32
  }
  func.func @transform_3(%arg0: i32) -> (i32, i32) {
    %c0_i32 = arith.constant 0 : i32
    %c0_i32_0 = arith.constant 0 : i32
    %c0_i32_1 = arith.constant 0 : i32
    return %c0_i32, %c0_i32_0 : i32, i32
  }
  func.func @transform_4(%arg0: i32) -> (i32, i32) {
    %c0_i32 = arith.constant 0 : i32
    %c0_i32_0 = arith.constant 0 : i32
    %c0_i32_1 = arith.constant 0 : i32
    return %c0_i32, %c0_i32_0 : i32, i32
  }
  func.func @transform_5(%arg0: i32) -> (i32, i32) {
    %c0_i32 = arith.constant 0 : i32
    %c0_i32_0 = arith.constant 0 : i32
    return %arg0, %c0_i32 : i32, i32
  }
}

</mosaic_0001>

<bundles_post_ra>
// kernel: tpu_custom_call.1
= control target key start
LH: loop header
LB: loop body
LE: loop exit
PB: predicated region body
PF: predicated region fallthrough
CT: control target
= control target key end

     0   :  { %10 = vsyncpa [#allocation3], 0  ;;  %s880_s0 = inlined_call_operand.vmem [shape: f32[16,128], index: 0, kind: input, shape index: {}]   ;;  %s881_s1 = inlined_call_operand.vmem [shape: f32[128,16], index: 1, kind: input, shape index: {}]   ;;  %s882_s2 = inlined_call_operand.vmem [shape: f32[1,16], index: 2, kind: input, shape index: {}]   ;;  %s883_s3 = inlined_call_operand.vmem [shape: f32[16,128], index: 3, kind: input, shape index: {}]   ;;  %s884_s4 = inlined_call_operand.vmem [shape: f32[1,128], index: 4, kind: input, shape index: {}]   ;;  %s885_s5 = inlined_call_operand.hbm [shape: f32[16,128], index: 5, kind: output, shape index: {}]  }
   0x1   :  { %12 = vsyncpa [#allocation3 + $0x1], 0  ;;  %s720_s18 = smov 0   ;;  %s722_s19 = smov 0  }
   0x2   :  { %s724_s20 = smov 0   ;;  %s726_s21 = smov 0  }
   0x3 LB: > { %s741_s22 = sadd.s32 4294967295, %s684_s21   ;;  %s476_s23 = sadd.s32 4294967294, %s684_s21   ;;  %s684_s21 = sphi %s726_s21, %s891_s21   ;;  %s680_s20 = sphi %s724_s20, %s890_s20   ;;  %s676_s19 = sphi %s722_s19, %s889_s19   ;;  %s672_s18 = sphi %s720_s18, %s888_s18  }
   0x4   : > { %s745_s24 = sadd.s32 1, %s684_s21   ;;  %s135_s25 = sadd.s32 1, %s680_s20 }
   0x5   : > { %s132_s26 = ssub.s32 %s684_s21, %s745_s24  ;;  %p145_p0 = scmp.ne.s32.totalorder %s680_s20, %s676_s19 }
   0x6   : > { %p133_p1 = scmp.eq.s32.totalorder %s132_s26, 0  ;;  %p146_p2 = scmp.eq.s32.totalorder %s741_s22, 1 }
   0x7   : > { %p151_p3 = scmp.ne.s32.totalorder %s676_s19, %s672_s18  ;;  %p152_p4 = scmp.eq.s32.totalorder %s476_s23, 1 }
   0x8   : > { %s756_s27 = scalar_select %p133_p1, %s680_s20, %s135_s25  }
   0x9   : > { %p758_p5 = por %p146_p2, %p145_p0  ;;  %p762_p6 = por %p152_p4, %p151_p3 }
   0xa   : > { %p479_p7 = scmp.ge.s32.totalorder %s684_s21, 1  ;;  %p189_p8 = scmp.lt.s32.totalorder %s684_s21, 3 }
   0xc   : > { %p190_p9 = pnand %p479_p7, %p189_p8 }
   0xd   : > { %v221_v0 = vld [vmem:[%s881_s1] sm:$0xff] (!%p190_p9)  ;;  %v222_v1 = vld [vmem:[%s881_s1 + $0x8] sm:$0xff] (!%p190_p9)  ;;  %v223_v2 = vld [vmem:[%s881_s1 + $0x10] sm:$0xff] (!%p190_p9)  ;;  %v686_v3 = vmov (!%p190_p9), 0.0|0.0   ;;  %vm687_vm0 = vmmov (!%p190_p9), 0   ;;  %v688_v6 = vmov (!%p190_p9), 0.0  }
   0xe   : > { %193 = sbr.rel (%p190_p9) target bundleno = 506 (0x1fa), region = 40  ;;  %551 = vmatprep.subr.bf16.mxu0 (!%p190_p9), %v686_v3  ;;  %v552_v4 = vpack.c.bf16 (!%p190_p9), %v222_v1, %v221_v0  ;;  %v224_v5 = vld [vmem:[%s881_s1 + $0x18] sm:$0xff] (!%p190_p9)  ;;  %541 = vmatprep.mubr.msk.f32.mxu0 (!%p190_p9), %vm687_vm0, %v688_v6  ;;  %v225_v8 = vld [vmem:[%s881_s1 + $0x20] sm:$0xff] (!%p190_p9)  ;;  %v226_v9 = vld [vmem:[%s881_s1 + $0x28] sm:$0xff] (!%p190_p9)  ;;  %p216_p10 = scmp.lt.s32.totalorder (!%p190_p9), %s741_s22, 1  ;;  %vm328_vm1 = vcmask (!%p190_p9), 130048  }
   0xf   : > { %575 = vmatprep.subr.bf16.mxu1 (!%p190_p9), %v686_v3  ;;  %548 = vmatprep.mubr.msk.f32.mxu1 (!%p190_p9), %vm687_vm0, %v688_v6  ;;  %v555_v7 = vpack.c.bf16 (!%p190_p9), %v224_v5, %v223_v2  ;;  %v558_v10 = vpack.c.bf16 (!%p190_p9), %v226_v9, %v225_v8  ;;  %v227_v11 = vld [vmem:[%s881_s1 + $0x30] sm:$0xff] (!%p190_p9)  ;;  %v228_v12 = vld [vmem:[%s881_s1 + $0x38] sm:$0xff] (!%p190_p9)  ;;  %v229_v14 = vld [vmem:[%s881_s1 + $0x40] sm:$0xff] (!%p190_p9)  ;;  %s213_s16 = sand.u32 (!%p190_p9), 1, %s676_s19   ;;  %s486_s26 = sshll.u32 (!%p190_p9), %s741_s22, 7 }
  0x10   : > { %553 = vmatpush3.bf16.msra.mxu0 (!%p190_p9), %v552_v4  ;;  %v561_v13 = vpack.c.bf16 (!%p190_p9), %v228_v12, %v227_v11  ;;  %v230_v15 = vld [vmem:[%s881_s1 + $0x48] sm:$0xff] (!%p190_p9)  ;;  %v231_v17 = vld [vmem:[%s881_s1 + $0x50] sm:$0xff] (!%p190_p9)  ;;  %v232_v18 = vld [vmem:[%s881_s1 + $0x58] sm:$0xff] (!%p190_p9)  ;;  %s404_s10 = scalar_lea.sflag (!%p190_p9), [#allocation3], %s213_s16 }
  0x11   : > { %554 = vmatprep.subr.bf16.mxu0 (!%p190_p9), %v686_v3  ;;  %v564_v16 = vpack.c.bf16 (!%p190_p9), %v230_v15, %v229_v14  ;;  %v567_v19 = vpack.c.bf16 (!%p190_p9), %v232_v18, %v231_v17  ;;  %v233_v20 = vld [vmem:[%s881_s1 + $0x60] sm:$0xff] (!%p190_p9)  ;;  %v234_v21 = vld [vmem:[%s881_s1 + $0x68] sm:$0xff] (!%p190_p9)  ;;  %v235_v23 = vld [vmem:[%s881_s1 + $0x70] sm:$0xff] (!%p190_p9) }
  0x12   : > { %v570_v22 = vpack.c.bf16 (!%p190_p9), %v234_v21, %v233_v20  ;;  %v236_v24 = vld [vmem:[%s881_s1 + $0x78] sm:$0xff] (!%p190_p9)  ;;  %v319_v27 = vld [vmem:[%s883_s3] sm:$0xff] (!%p190_p9)  ;;  %v320_v28 = vld [vmem:[%s883_s3 + $0x8] sm:$0xff] (!%p190_p9) }
  0x13   : > { %v573_v25 = vpack.c.bf16 (!%p190_p9), %v236_v24, %v235_v23  ;;  %v576_v29 = vpack.c.bf16 (!%p190_p9), %v320_v28, %v319_v27  ;;  %v482_v30 = vld [vmem:[%s882_s2] ss:$0 sm:$0xff] (!%p190_p9) }
  0x14   : > { %556 = vmatpush3.bf16.msra.mxu0 (!%p190_p9), %v555_v7  ;;  %v483_v39 = vld [vmem:[%s884_s4] ss:$0 sm:$0xff] (!%p190_p9) }
  0x15   : > { %557 = vmatprep.subr.bf16.mxu0 %v686_v3  ;;  %s217_s17 = scalar_select %p216_p10, %s741_s22, 1  ;;  %577 = vmatpush3.bf16.msra.mxu1 %v576_v29 }
  0x16   : > { %s689_s22 = smov [#allocation2]  }
  0x17   : > { %s481_s6 = sshll.u32 %s217_s17, 3  ;;  %s480_s17 = sshll.u32 %s213_s16, 3 }
  0x18   : > { %559 = vmatpush3.bf16.msra.mxu0 %v558_v10  ;;  %s219_s9 = scalar_lea.vmem %s880_s0, %s481_s6  ;;  %s215_s30 = scalar_lea.vmem [#allocation2], %s480_s17 }
  0x19   : > { %560 = vmatprep.subr.bf16.mxu0 %v686_v3  ;;  %v220_v26 = vld [vmem:[%s219_s9] sm:$0xff]  ;;  %s417_s6 = sshll.u32 %s215_s30, 4  ;;  %s838_s9 = scalar_lea.hbm %s885_s5, %s486_s26  ;;  %s840_s6 = int_to_ptr.vmem [resolvable:$true] %s417_s6 }
  0x1a   : > { %s622_s11 = scalar_lea.vmem %s840_s6, 128  ;;  %s626_s12 = sshll.u32 %s689_s22, 4  ;;  %s627_s12 = int_to_ptr.vmem [resolvable:$false] %s626_s12 }
  0x1b   : > { %p623_p11 = scmp.ne.s32.totalorder %s840_s6, %s622_s11  ;;  %s628_s13 = scalar_lea.vmem %s627_s12, 256 }
  0x1c   : > { %562 = vmatpush3.bf16.msra.mxu0 %v561_v13  ;;  %p629_p0 = scmp.lt.s32.totalorder %s840_s6, %s627_s12  ;;  %p630_p1 = scmp.lt.s32.totalorder %s628_s13, %s622_s11 }
  0x1d   : > { %563 = vmatprep.subr.bf16.mxu0 %v686_v3  ;;  %p624_p12 = pnand %p623_p11, %p758_p5 }
  0x1e   : > { %p631_p2 = por %p630_p1, %p629_p0 }
  0x1f   : > { %p625_p13 = pneg %p624_p12 }
  0x20   : > { %565 = vmatpush3.bf16.msra.mxu0 %v564_v16 }
  0x21   : > { %566 = vmatprep.subr.bf16.mxu0 %v686_v3  ;;  %p632_p3 = pnand %p631_p2, %p625_p13 }
  0x24   : > { %568 = vmatpush3.bf16.msra.mxu0 %v567_v19 }
  0x25   : > { %569 = vmatprep.subr.bf16.mxu0 %v686_v3 }
  0x28   : > { %571 = vmatpush3.bf16.msra.mxu0 %v570_v22 }
  0x29   : > { %572 = vmatprep.subr.bf16.mxu0 %v686_v3 }
  0x2c   : > { %574 = vmatpush3.bf16.msra.mxu0 %v573_v25 }
  0x2f   : > { %542 = vmatmul.mubr.f32.vlgmr.msra.gmra.mrb[0].mxu0 %v220_v26 }
 0x102   : > { %v310_v31 = vpop.f32.mrb[0].mxu0 }
 0x103   : > { %v311_v32 = vadd.f32 %v482_v30, %v310_v31  ;;  %v543_v33 = vpop.f32.mrb[1].mxu0 }
 0x105   : > { %v315_v34 = vmul.f32 0.70710677, %v311_v32  ;;  %v314_v36 = vmul.f32 0.5, %v311_v32 }
 0x107   : > { %620 = verf.f32 %v315_v34 }
 0x111   : > { %v621_v35 = vpop.eup %620 }
 0x112   : > { %v317_v37 = vadd.f32 1.0, %v621_v35 }
 0x114   : > { %v318_v38 = vmul.f32 %v317_v37, %v314_v36 }
 0x116   : > { %549 = vmatmul.mubr.msk.f32.vlgmr.msra.gmra.mrb[0].mxu1 %vm328_vm1, %v318_v38 }
 0x1e9   : > { %v398_v40 = vpop.f32.mrb[0].mxu1 }
 0x1ea   : > { %v399_v41 = vadd.f32 %v483_v39, %v398_v40  ;;  %v550_v42 = vpop.f32.mrb[1].mxu1 }
 0x1ec   : > { %402 = vst [vmem:[%s215_s30] sm:$0xff] %v399_v41 }
 0x1ed   : > { %635 = shalt.err (!%p632_p3)
}
 0x1ee   : > { %s636_s14 = scalar_lea.hbm %s838_s9, 128  ;;  %s640_s17 = scalar_lea.hbm %s885_s5, 256 }
 0x1ef   : > { %p637_p4 = scmp.ne.s32.totalorder %s838_s9, %s636_s14  ;;  %p641_p9 = scmp.lt.u32.totalorder %s838_s9, %s885_s5 }
 0x1f0   : > { %p642_p10 = scmp.lt.u32.totalorder %s640_s17, %s636_s14  ;;  %p644_p12 = scmp.lt.u32.totalorder %s636_s14, %s838_s9 }
 0x1f1   : > { %p638_p7 = pnand %p637_p4, %p758_p5 }
 0x1f2   : > { %p643_p11 = por %p642_p10, %p641_p9 }
 0x1f3   : > { %p639_p8 = pneg %p638_p7 }
 0x1f4   : > { %p645_p13 = por %p644_p12, %p643_p11 }
 0x1f6   : > { %p646_p0 = pnand %p645_p13, %p639_p8 }
 0x1f8   : > { %649 = shalt.err (!%p646_p0)
}
 0x1f9   : > { %578 = dma.vmem_to_hbm [thread:$0]  (%p758_p5), %s840_s6, 128, %s838_s9, %s404_s10  }
 0x1fa PF: > { %p584_p1 = scmp.ge.s32.totalorder %s684_s21, 2  ;;  %s429_s26 = sand.u32 1, %s672_s18  }
 0x1fb   : > { %s430_s30 = scalar_lea.sflag [#allocation3], %s429_s26 }
 0x1fc   : > { %p581_p2 = pnand %p584_p1, %p762_p6 }
 0x1fe   : > { %667 = dma.done.wait (!%p581_p2), %s430_s30, 128  }
 0x1ff   : > { %669 = vsyncadd (!%p581_p2), %s430_s30, 4294967168  ;;  %p15_p3 = scmp.ge.s32.totalorder %s745_s24, 4   ;;  %s888_s18 = smov %s676_s19 }
 0x200   : > { %s889_s19 = smov %s680_s20  ;;  %s890_s20 = smov %s756_s27 }
 0x201   : > { %s891_s21 = smov %s745_s24  ;;  %17 = sbr.rel (!%p15_p3) target bundleno = 3 (0x3), region = 75 }
 0x208   :  { %435 = vsyncpa [#allocation3], 1 }
 0x209   :  { %437 = vsyncpa [#allocation3 + $0x1], 1 }

</bundles_post_ra>
